<compile_context>
chip_gen: v5e
topology: v5e:2x2
jax: 0.10.0
libtpu: 0.0.40
codegen_flags: <defaults>
</compile_context>

<pallas_src>
import functools
import math

import jax
import jax.numpy as jnp
from jax.experimental import pallas as pl
from jax.experimental.pallas import tpu as pltpu


# ------------------------------ pe table -------------------------------------

def make_pe(max_len, d_model, dtype=jnp.float32):
    """Same table as the PyTorch registered buffer, shape (max_len, 1, d_model)."""
    position = jnp.arange(max_len, dtype=jnp.float32)[:, None]
    div_term = jnp.exp(jnp.arange(0, d_model, 2, dtype=jnp.float32)
                       * (-math.log(10000.0) / d_model))
    pe = jnp.zeros((max_len, d_model), jnp.float32)
    pe = pe.at[:, 0::2].set(jnp.sin(position * div_term))
    pe = pe.at[:, 1::2].set(jnp.cos(position * div_term))
    return pe[:, None, :].astype(dtype)          # matches pe.unsqueeze(1)


# ------------------------------ Pallas kernel --------------------------------

def _pe_add_kernel(x_ref, pe_ref, o_ref, *, batch):
    # x_ref/o_ref: (tile_t, B*D)   pe_ref: (tile_t, D)
    pe_v = pe_ref[...]
    if batch > 1:
        pe_v = jnp.tile(pe_v, (1, batch))        # lane-tile in VMEM; never hits HBM
    o_ref[...] = x_ref[...] + pe_v


def _round_up(x, m):
    return ((x + m - 1) // m) * m


def _vmem_budget_bytes():
    """Generation-aware VMEM budget for the double-buffered working set."""
    default = 8 << 20                            # safe under v5e's 16 MiB scoped default
    try:
        cap = pltpu.get_tpu_info().vmem_capacity_bytes   # 64 MiB v7x, 128 MiB v5e/v6e
        return max(2 << 20, min(default, cap // 8))
    except Exception:
        return default


def _choose_tile_t(T, B, D, itemsize, vmem_budget_bytes):
    """Largest multiple-of-8 T tile that fits the budget, keeps >=2 grid steps
    when T >= 16 (v7x megacore), and prefers tiles that divide T evenly."""
    # Per T-row footprint: x in (2x buffered) + out (2x) + pe (2x) + in-kernel
    # broadcast temp (~2x B*D).  Conservative on purpose.
    per_row = (2 * B * D + 2 * B * D + 2 * D + 2 * B * D) * itemsize
    tile = max(1, vmem_budget_bytes // max(per_row, 1))
    tile = min(tile, _round_up(pl.cdiv(T, 2), 8))        # >=2 equal tiles when T >= 16
    tile = max(8, (tile // 8) * 8)                       # sublane-dense
    tile = min(tile, _round_up(T, 8))
    t = tile
    while t >= 8:                                        # prefer no ragged tail block
        if T % t == 0:
            return t
        t -= 8
    return tile


def positional_encoding_forward(x, pe):
    """x: (T, B, D); pe: (max_len, 1, D).  Returns x + pe[:T] (eval-mode dropout)."""
    T, B, D = x.shape
    max_len = pe.shape[0]
    assert T <= max_len, "sequence length exceeds positional-encoding table"

    # Free, layout-plumbing reshapes (both arrays are contiguous) + hoisted cast.
    x2 = x.reshape(T, B * D)                     # lane-dense view of x
    pe2 = pe.reshape(max_len, D).astype(x.dtype)  # full table; no per-call slice

    itemsize = x.dtype.itemsize
    tile_t = _choose_tile_t(T, B, D, itemsize, _vmem_budget_bytes())
    grid = (pl.cdiv(T, tile_t),)

    cost = pl.CostEstimate(
        flops=T * B * D,
        transcendentals=0,
        bytes_accessed=(2 * T * B * D + T * D) * itemsize,
    )

    out2 = pl.pallas_call(
        functools.partial(_pe_add_kernel, batch=B),
        out_shape=jax.ShapeDtypeStruct((T, B * D), x.dtype),
        grid=grid,
        in_specs=[
            pl.BlockSpec((tile_t, B * D), lambda i: (i, 0)),   # x tile
            pl.BlockSpec((tile_t, D), lambda i: (i, 0)),       # pe tile (rows < T only)
        ],
        out_specs=pl.BlockSpec((tile_t, B * D), lambda i: (i, 0)),
        compiler_params=pltpu.CompilerParams(
            dimension_semantics=("parallel",)),   # megacore shard on v7x
        cost_estimate=cost,
    )(x2, pe2)

    return out2.reshape(T, B, D)


# ---------------------------------- main --------------------------------------

if __name__ == "__main__":
    T, B, D = 8, 2, 32                           # (seq, batch, d_model) — small demo
    MAX_LEN = 16

    key = jax.random.PRNGKey(0)
    x = jax.random.normal(key, (T, B, D), jnp.float32)
    pe = make_pe(MAX_LEN, D)

    out = jax.block_until_ready(positional_encoding_forward(x, pe))

    ref = x + pe[:T]                             # pure-JAX reference
    assert out.shape == (T, B, D)
    assert bool(jnp.all(jnp.isfinite(out)))
    assert bool(jnp.allclose(out, ref, atol=1e-6, rtol=1e-6))
    print("KERNEL_OK")
</pallas_src>

<mosaic_0001>
module attributes {stable_mosaic.version = 11 : i64} {
  func.func @_pe_add_kernel(%arg0: i32, %arg1: memref<8x64xf32, #tpu.memory_space<vmem>>, %arg2: memref<8x32xf32, #tpu.memory_space<vmem>>, %arg3: memref<8x64xf32, #tpu.memory_space<vmem>>) attributes {dimension_semantics = [#tpu.dimension_semantics<parallel>], iteration_bounds = array<i64: 1>, scalar_prefetch = 0 : i64, scratch_operands = 0 : i64, tpu.core_type = #tpu.core_type<tc>, window_params = [{transform_indices = @transform_0, window_bounds = array<i64: 8, 64>}, {transform_indices = @transform_1, window_bounds = array<i64: 8, 32>}, {transform_indices = @transform_2, window_bounds = array<i64: 8, 64>}]} {
    %c0 = arith.constant 0 : index
    %c0_0 = arith.constant 0 : index
    %0 = vector.load %arg2[%c0, %c0_0] : memref<8x32xf32, #tpu.memory_space<vmem>>, vector<8x32xf32>
    %1 = tpu.concatenate %0, %0 in 1 : vector<8x32xf32>, vector<8x32xf32> -> vector<8x64xf32>
    %c0_1 = arith.constant 0 : index
    %c0_2 = arith.constant 0 : index
    %2 = vector.load %arg1[%c0_1, %c0_2] : memref<8x64xf32, #tpu.memory_space<vmem>>, vector<8x64xf32>
    %3 = arith.addf %2, %1 : vector<8x64xf32>
    %c0_3 = arith.constant 0 : index
    %c0_4 = arith.constant 0 : index
    %4 = vector.load %arg3[%c0_3, %c0_4] : memref<8x64xf32, #tpu.memory_space<vmem>>, vector<8x64xf32>
    tpu.vector_store %arg3[%c0_3, %c0_4], %3 {strides = array<i32>} : memref<8x64xf32, #tpu.memory_space<vmem>>, vector<8x64xf32>,
    return
  }
  func.func @transform_0(%arg0: i32) -> (i32, i32) {
    %c0_i32 = arith.constant 0 : i32
    %c0_i32_0 = arith.constant 0 : i32
    return %arg0, %c0_i32 : i32, i32
  }
  func.func @transform_1(%arg0: i32) -> (i32, i32) {
    %c0_i32 = arith.constant 0 : i32
    %c0_i32_0 = arith.constant 0 : i32
    return %arg0, %c0_i32 : i32, i32
  }
  func.func @transform_2(%arg0: i32) -> (i32, i32) {
    %c0_i32 = arith.constant 0 : i32
    %c0_i32_0 = arith.constant 0 : i32
    return %arg0, %c0_i32 : i32, i32
  }
}

</mosaic_0001>

<bundles_post_ra>
// kernel: tpu_custom_call.1
= control target key start
LH: loop header
LB: loop body
LE: loop exit
PB: predicated region body
PF: predicated region fallthrough
CT: control target
= control target key end

     0   :  { %7 = vsyncpa [#allocation3], 0  ;;  %s179_s0 = inlined_call_operand.hbm [shape: f32[8,64], index: 0, kind: input, shape index: {}]   ;;  %s180_s1 = inlined_call_operand.hbm [shape: f32[16,32], index: 1, kind: input, shape index: {}]   ;;  %s181_s2 = inlined_call_operand.hbm [shape: f32[8,64], index: 2, kind: output, shape index: {}]  }
   0x1   :  { %8 = vsyncpa [#allocation6], 0 }
   0x2   :  { %9 = vsyncpa [#allocation4], 0  ;;  %s15_s11 = sshll.u32 %s179_s0, 4  ;;  %s151_s12 = smov [#allocation2]   ;;  %s16_s11 = int_to_ptr.hbm [resolvable:$true] %s15_s11 }
   0x3   :  { %s17_s13 = sshll.u32 %s151_s12, 4  ;;  %s26_s16 = sshll.u32 %s180_s1, 4  ;;  %s18_s13 = int_to_ptr.vmem [resolvable:$true] %s17_s13  ;;  %s27_s16 = int_to_ptr.hbm [resolvable:$true] %s26_s16 }
   0x4   :  { %20 = dma.hbm_to_vmem [thread:$0]  %s16_s11, 128, %s18_s13, [#allocation3]  }
   0x5   :  { %s152_s17 = smov [#allocation5]  }
   0x6   :  { %s28_s18 = sshll.u32 %s152_s17, 4  ;;  %s29_s18 = int_to_ptr.vmem [resolvable:$true] %s28_s18 }
   0x7   :  { %31 = dma.hbm_to_vmem [thread:$0]  %s27_s16, 128, %s29_s18, [#allocation6]  }
   0x8   :  { %145 = dma.done.wait [#allocation3], 128  }
   0x9   :  { %146 = vsyncadd [#allocation3], 4294967168 }
   0xa   :  { %147 = dma.done.wait [#allocation6], 128  }
   0xb   :  { %148 = vsyncadd [#allocation6], 4294967168  ;;  %v40_v0 = vld [vmem:[#allocation5] sm:$0xff]  ;;  %s153_s0 = smov 32   ;;  %vm45_vm0 = vcmask 261120   ;;  %v47_v1 = vld [vmem:[#allocation2] sm:$0xff] }
   0xc   :  { %42 = vrot.lane.b32.xlu0 %v40_v0, %s153_s0  ;;  %s154_s19 = smov [#allocation7]   ;;  %s58_s1 = sshll.u32 %s181_s2, 4  ;;  %vm49_vm1 = vcmask 523264   ;;  %s59_s1 = int_to_ptr.hbm [resolvable:$true] %s58_s1 }
   0xd   :  { %s56_s20 = sshll.u32 %s154_s19, 4  ;;  %s57_s20 = int_to_ptr.vmem [resolvable:$true] %s56_s20 }
  0x7e   :  { %v43_v2 = vpop.permute.xlu0 %42 }
  0x7f   :  { %v46_v3 = vsel %vm45_vm0, %v40_v0, %v43_v2 }
  0x80   :  { %v48_v4 = vadd.f32 %v47_v1, %v46_v3 }
  0x82   :  { %50 = vst.msk [vmem:[#allocation7] sm:$0xff] %vm49_vm1, %v48_v4 }
  0x83   :  { %61 = dma.vmem_to_hbm [thread:$0]  %s57_s20, 128, %s59_s1, [#allocation4]  }
  0x84   :  { %149 = dma.done.wait [#allocation4], 128  }
  0x85   :  { %150 = vsyncadd [#allocation4], 4294967168 }
  0x86   :  { %66 = vsyncpa [#allocation3], 1 }
  0x87   :  { %67 = vsyncpa [#allocation6], 1 }
  0x88   :  { %68 = vsyncpa [#allocation4], 1 }

</bundles_post_ra>
